<compile_context>
chip_gen: v6e
topology: v6e:2x2x1
jax: 0.10.0
libtpu: 0.0.40
codegen_flags: <defaults>
</compile_context>

<pallas_src>
import functools

import jax
import jax.numpy as jnp
from jax import lax
from jax.experimental import pallas as pl
from jax.experimental.pallas import tpu as pltpu


def _round_up(v, m):
    return ((v + m - 1) // m) * m


# -----------------------------------------------------------------------------
# Pallas kernel: full MLP forward for one batch tile, chunked along the batch.
# refs = (x_ref, w1_ref, b1_ref, ..., wL_ref, bL_ref, o_ref)
#   x_ref : (tile_b, d_in)   natural torch layout, contiguous DMA
#   w_ref : (out_l, in_l)    for layers 0..L-2 (torch layout)
#   wL_ref: (in_L, d_out)    last layer weight, pre-transposed in the wrapper
#   b_ref : (out_l, 1) f32   for layers 0..L-2 (broadcasts over lanes = batch)
#   bL_ref: (1, d_out) f32   last layer bias (broadcasts over sublanes = batch)
#   o_ref : (tile_b, d_out)  torch layout, stored directly (no XLA transpose)
# -----------------------------------------------------------------------------
def _mlp_kernel(num_linear, use_sigmoid, n_chunks, chunk_b, act_dtype, *refs):
    x_ref = refs[0]
    o_ref = refs[-1]
    wb = refs[1:-1]

    def chunk_body(c, carry):
        start = pl.multiple_of(c * chunk_b, chunk_b)

        # ---- layer 1: contract x's last dim (rhs-transposed MXU matmul) ----------
        # (h1, chunk_b) result -> batch lives on lanes for the whole hidden stack.
        w1, b1 = wb[0], wb[1]
        xg = x_ref[pl.ds(start, chunk_b), :]                       # (chunk_b, d_in)
        h = lax.dot_general(
            w1[...], xg.astype(w1.dtype),
            dimension_numbers=(((1,), (1,)), ((), ())),
            preferred_element_type=jnp.float32,
        ) + b1[...]                                                # (h1, chunk_b) f32
        h = h.astype(act_dtype)

        # ---- hidden layers: lane-dense feature-major matmul, fused ReLU ----------
        for l in range(1, num_linear - 1):
            w, b = wb[2 * l], wb[2 * l + 1]
            h = jnp.maximum(h, 0)                                  # ReLU in act_dtype
            h = jnp.dot(
                w[...], h.astype(w.dtype), preferred_element_type=jnp.float32
            ) + b[...]                                             # (h_l, chunk_b) f32
            h = h.astype(act_dtype)

        # ---- last layer: contract the feature (sublane) dim of both operands -----
        # (lhs-transposed MXU matmul) so the result is already (chunk_b, d_out) in
        # torch layout and is stored straight to o_ref -> no output transpose at all.
        wl, bl = wb[2 * (num_linear - 1)], wb[2 * (num_linear - 1) + 1]
        h = jnp.maximum(h, 0)
        o = lax.dot_general(
            h.astype(wl.dtype), wl[...],
            dimension_numbers=(((0,), (0,)), ((), ())),
            preferred_element_type=jnp.float32,
        ) + bl[...]                                                # (chunk_b, d_out) f32
        if use_sigmoid:
            o = jax.nn.sigmoid(o)
        o_ref[pl.ds(start, chunk_b), :] = o.astype(o_ref.dtype)
        return carry

    # fori_loop (not a Python loop) bounds live ranges per chunk; light unroll for
    # scheduler visibility when the trip count allows it.
    unroll = 2 if (n_chunks % 2 == 0 and n_chunks > 1) else 1
    lax.fori_loop(0, n_chunks, chunk_body, 0, unroll=unroll)


# -----------------------------------------------------------------------------
# Wrapper: tiling decisions + BlockSpecs + pallas_call.
# -----------------------------------------------------------------------------
def fc_cond_gen_2d_forward(
    x,
    weights,
    biases,
    *,
    use_sigmoid=False,
    tile_b=4096,
    chunk_b=256,
    param_dtype=jnp.float32,
    act_dtype=None,
    out_dtype=jnp.float32,
    min_grid_steps=2,
):
    """FCCondGen_2d.forward.

    x: (B, d_in) float.  weights[i]: (out_i, in_i) torch layout (already spectral-
    normed).  biases[i]: (out_i,).  Returns (B, d_out) in out_dtype.

    chunk_b=256 keeps the two lane-sparse batch-major slabs (the (chunk_b, d_in) x
    chunk and the (chunk_b, d_out) output chunk) at <=32 vregs each, while the
    lane-dense feature-major hidden activations are only a handful of vregs, so the
    live set stays well under the 64-vreg file -> no spills even at large tile_b.
    Default VMEM footprint (tile_b=4096, f32) is ~8 MiB, under every generation's
    default scoped limit; raise vmem_limit_bytes only if tile_b is pushed past ~8K.
    """
    B, d_in = x.shape
    num_linear = len(weights)
    assert num_linear >= 2, "FCCondGen_2d always has at least fc1..fc3"
    d_out = int(weights[-1].shape[0])
    act_dtype = param_dtype if act_dtype is None else act_dtype

    # --- batch tiling: big tiles, partial tail handled by Pallas, >=2 steps if we can
    B_pad = _round_up(B, 128)
    tile_b = min(_round_up(max(int(tile_b), 128), 128), B_pad)
    if min_grid_steps > 1 and B_pad >= min_grid_steps * 128:
        tile_b = min(tile_b, _round_up(pl.cdiv(B_pad, min_grid_steps), 128))
    chunk_b = min(_round_up(max(int(chunk_b), 128), 128), tile_b)
    while tile_b % chunk_b:          # chunk must divide the tile; 128 always does
        chunk_b -= 128
    n_chunks = tile_b // chunk_b
    grid = (pl.cdiv(B, tile_b),)

    # --- parameter preprocessing (tiny, one-time) ---------------------------------
    flops = 2 * B * sum(int(w.shape[0]) * int(w.shape[1]) for w in weights)
    ws = [jnp.asarray(w, dtype=param_dtype) for w in weights[:-1]]
    ws.append(jnp.asarray(weights[-1], dtype=param_dtype).T)        # (in_L, d_out)
    bs = [jnp.asarray(b, dtype=jnp.float32).reshape(-1, 1) for b in biases[:-1]]
    bs.append(jnp.asarray(biases[-1], dtype=jnp.float32).reshape(1, -1))

    kernel = functools.partial(
        _mlp_kernel, num_linear, bool(use_sigmoid), n_chunks, chunk_b, act_dtype
    )

    in_specs = [pl.BlockSpec((tile_b, d_in), lambda i: (i, 0))]
    operands = [x]
    for w, b in zip(ws, bs):
        # Weights/biases are tiny and their index_map is constant -> fetched once and
        # resident in VMEM across all grid steps.
        in_specs.append(pl.BlockSpec(w.shape, lambda i: (0, 0)))
        in_specs.append(pl.BlockSpec(b.shape, lambda i: (0, 0)))
        operands.append(w)
        operands.append(b)

    bytes_accessed = (
        B * d_in * x.dtype.itemsize
        + B * d_out * jnp.dtype(out_dtype).itemsize
        + sum(int(w.size) * jnp.dtype(param_dtype).itemsize for w in ws)
        + sum(int(b.size) * 4 for b in bs)
    )
    transcendentals = B * d_out if use_sigmoid else 0

    out = pl.pallas_call(
        kernel,
        out_shape=jax.ShapeDtypeStruct((B, d_out), out_dtype),
        grid=grid,
        in_specs=in_specs,
        out_specs=pl.BlockSpec((tile_b, d_out), lambda i: (i, 0)),
        compiler_params=pltpu.CompilerParams(
            # "parallel": independent batch tiles -> v7x megacore shards the grid.
            dimension_semantics=("parallel",)
        ),
        cost_estimate=pl.CostEstimate(
            flops=flops, transcendentals=transcendentals, bytes_accessed=bytes_accessed
        ),
    )(*operands)
    return out


# -----------------------------------------------------------------------------
# Parameter setup (PyTorch nn.Linear-style init) + eval-mode spectral norm.
# -----------------------------------------------------------------------------
def _init_linear(key, fan_in, fan_out):
    # torch.nn.Linear default: weight, bias ~ U(-1/sqrt(fan_in), 1/sqrt(fan_in)).
    kw, kb = jax.random.split(key)
    bound = 1.0 / jnp.sqrt(fan_in)
    w = jax.random.uniform(kw, (fan_out, fan_in), jnp.float32, -bound, bound)
    b = jax.random.uniform(kb, (fan_out,), jnp.float32, -bound, bound)
    return w, b


def _spectral_normalize(w, key, n_iter=30):
    # Eval-mode spectral_norm semantics: W / sigma_max(W), sigma via power iteration.
    # TODO(synk): torch's training-mode spectral_norm does 1 power-iteration step per
    # forward with a persistent torch-RNG u vector; we iterate to convergence instead.
    u = jax.random.normal(key, (w.shape[0],), jnp.float32)
    u = u / (jnp.linalg.norm(u) + 1e-12)
    v = None
    for _ in range(n_iter):
        v = w.T @ u
        v = v / (jnp.linalg.norm(v) + 1e-12)
        u = w @ v
        u = u / (jnp.linalg.norm(u) + 1e-12)
    sigma = u @ (w @ v)
    return w / sigma


def build_params(key, d_code, n_labels, d_hid_str, d_out, spectral_norm=True):
    d_hid = [int(k) for k in d_hid_str.split(",")]
    assert len(d_hid) < 5
    dims = [d_code + n_labels] + d_hid + [d_out]
    num_linear = len(dims) - 1
    weights, biases = [], []
    keys = jax.random.split(key, 2 * num_linear)
    for i in range(num_linear):
        w, b = _init_linear(keys[2 * i], dims[i], dims[i + 1])
        if spectral_norm and i < num_linear - 1:   # module: all but the last linear
            w = _spectral_normalize(w, keys[2 * i + 1])
        weights.append(w)        # (out, in) torch layout
        biases.append(b)         # (out,)
    return weights, biases


# -----------------------------------------------------------------------------
# Pure-JAX reference for correctness checks.
# -----------------------------------------------------------------------------
def reference_forward(x, weights, biases, use_sigmoid=False):
    h = x
    for i, (w, b) in enumerate(zip(weights, biases)):
        if i > 0:
            h = jnp.maximum(h, 0.0)
        h = h @ w.T + b.reshape(1, -1)
    if use_sigmoid:
        h = jax.nn.sigmoid(h)
    return h


if __name__ == "__main__":
    key = jax.random.PRNGKey(0)
    k_params_a, k_params_b, k_x = jax.random.split(key, 3)

    d_code, n_labels = 5, 3
    d_in = d_code + n_labels

    # Config A: two hidden layers (fc1, fc2, fc3) -> FCCondGen_2d(d_hid="32,32").
    w_a, b_a = build_params(k_params_a, d_code, n_labels, "32,32", 16, spectral_norm=True)

    # 1) f32 parity path, batch smaller than one 128-row tile.
    x1 = jax.random.normal(k_x, (10, d_in), jnp.float32)
    ref1 = reference_forward(x1, w_a, b_a, use_sigmoid=False)
    out1 = jax.block_until_ready(fc_cond_gen_2d_forward(x1, w_a, b_a, use_sigmoid=False))
    assert out1.shape == (10, 16) and out1.dtype == jnp.float32
    assert jnp.allclose(out1, ref1, atol=1e-5, rtol=1e-5), "f32 small-batch mismatch"

    # 2) f32 + sigmoid, multi-step grid, multi-chunk inner loop, partial tail tile.
    x2 = jax.random.normal(jax.random.PRNGKey(1), (300, d_in), jnp.float32)
    ref2 = reference_forward(x2, w_a, b_a, use_sigmoid=True)
    out2 = jax.block_until_ready(
        fc_cond_gen_2d_forward(x2, w_a, b_a, use_sigmoid=True, tile_b=256, chunk_b=128)
    )
    assert out2.shape == (300, 16)
    assert jnp.allclose(out2, ref2, atol=1e-5, rtol=1e-5), "multi-tile mismatch"

    # 3) bf16 weights + bf16 inter-layer activations + bf16 output (v6e/v7x fast path).
    out3 = jax.block_until_ready(
        fc_cond_gen_2d_forward(
            x2, w_a, b_a, use_sigmoid=True,
            param_dtype=jnp.bfloat16, out_dtype=jnp.bfloat16,
        )
    )
    assert out3.dtype == jnp.bfloat16
    assert jnp.allclose(out3.astype(jnp.float32), ref2, atol=3e-2, rtol=3e-2), \
        "bf16 path mismatch"

    # 4) Three hidden layers (fc1..fc4) to exercise the deeper stack.
    w_b, b_b = build_params(k_params_b, d_code, n_labels, "32,32,32", 16, spectral_norm=True)
    x3 = jax.random.normal(jax.random.PRNGKey(2), (64, d_in), jnp.float32)
    ref3 = reference_forward(x3, w_b, b_b, use_sigmoid=False)
    out4 = jax.block_until_ready(fc_cond_gen_2d_forward(x3, w_b, b_b, use_sigmoid=False))
    assert jnp.allclose(out4, ref3, atol=1e-5, rtol=1e-5), "4-linear config mismatch"

    print("KERNEL_OK")
</pallas_src>

<mosaic_0001>
module attributes {stable_mosaic.version = 11 : i64} {
  func.func @_mlp_kernel(%arg0: i32, %arg1: memref<128x8xf32, #tpu.memory_space<vmem>>, %arg2: memref<32x8xf32, #tpu.memory_space<vmem>>, %arg3: memref<32x1xf32, #tpu.memory_space<vmem>>, %arg4: memref<32x32xf32, #tpu.memory_space<vmem>>, %arg5: memref<32x1xf32, #tpu.memory_space<vmem>>, %arg6: memref<32x16xf32, #tpu.memory_space<vmem>>, %arg7: memref<1x16xf32, #tpu.memory_space<vmem>>, %arg8: memref<128x16xf32, #tpu.memory_space<vmem>>) attributes {dimension_semantics = [#tpu.dimension_semantics<parallel>], iteration_bounds = array<i64: 1>, scalar_prefetch = 0 : i64, scratch_operands = 0 : i64, tpu.core_type = #tpu.core_type<tc>, window_params = [{transform_indices = @transform_0, window_bounds = array<i64: 128, 8>}, {pipeline_mode = #tpu.pipeline_mode<synchronous>, transform_indices = @transform_1, window_bounds = array<i64: 32, 8>}, {pipeline_mode = #tpu.pipeline_mode<synchronous>, transform_indices = @transform_2, window_bounds = array<i64: 32, 1>}, {pipeline_mode = #tpu.pipeline_mode<synchronous>, transform_indices = @transform_3, window_bounds = array<i64: 32, 32>}, {pipeline_mode = #tpu.pipeline_mode<synchronous>, transform_indices = @transform_4, window_bounds = array<i64: 32, 1>}, {pipeline_mode = #tpu.pipeline_mode<synchronous>, transform_indices = @transform_5, window_bounds = array<i64: 32, 16>}, {pipeline_mode = #tpu.pipeline_mode<synchronous>, transform_indices = @transform_6, window_bounds = array<i64: 1, 16>}, {transform_indices = @transform_7, window_bounds = array<i64: 128, 16>}]} {
    %c0_i32 = arith.constant 0 : i32
    %c128_i32 = arith.constant 128 : i32
    %0 = arith.muli %c0_i32, %c128_i32 : i32
    %1 = tpu.assume_multiple %0, 128 : i32
    %2 = arith.index_cast %1 : i32 to index
    %c0 = arith.constant 0 : index
    %3 = vector.load %arg1[%2, %c0] : memref<128x8xf32, #tpu.memory_space<vmem>>, vector<128x8xf32>
    %c0_0 = arith.constant 0 : index
    %c0_1 = arith.constant 0 : index
    %4 = vector.load %arg2[%c0_0, %c0_1] : memref<32x8xf32, #tpu.memory_space<vmem>>, vector<32x8xf32>
    %cst = arith.constant dense<0.000000e+00> : vector<32x128xf32>
    %5 = tpu.matmul %4, %3, %cst {dimension_numbers = #tpu.dot_dimension_numbers<[1], [1], [0], [0], [0, 0, 1, 0], [], []>} : vector<32x8xf32>, vector<128x8xf32>, vector<32x128xf32> -> vector<32x128xf32>
    %c0_2 = arith.constant 0 : index
    %c0_3 = arith.constant 0 : index
    %6 = vector.load %arg3[%c0_2, %c0_3] : memref<32x1xf32, #tpu.memory_space<vmem>>, vector<32x1xf32>
    %7 = vector.broadcast %6 : vector<32x1xf32> to vector<32x128xf32>
    %8 = arith.addf %5, %7 : vector<32x128xf32>
    %cst_4 = arith.constant 0.000000e+00 : f32
    %9 = vector.broadcast %cst_4 : f32 to vector<32x128xf32>
    %10 = arith.maximumf %8, %9 : vector<32x128xf32>
    %c0_5 = arith.constant 0 : index
    %c0_6 = arith.constant 0 : index
    %11 = vector.load %arg4[%c0_5, %c0_6] : memref<32x32xf32, #tpu.memory_space<vmem>>, vector<32x32xf32>
    %cst_7 = arith.constant dense<0.000000e+00> : vector<32x128xf32>
    %12 = tpu.matmul %11, %10, %cst_7 {dimension_numbers = #tpu.dot_dimension_numbers<[1], [0], [0], [1], [0, 0, 1, 1], [], []>} : vector<32x32xf32>, vector<32x128xf32>, vector<32x128xf32> -> vector<32x128xf32>
    %c0_8 = arith.constant 0 : index
    %c0_9 = arith.constant 0 : index
    %13 = vector.load %arg5[%c0_8, %c0_9] : memref<32x1xf32, #tpu.memory_space<vmem>>, vector<32x1xf32>
    %14 = vector.broadcast %13 : vector<32x1xf32> to vector<32x128xf32>
    %15 = arith.addf %12, %14 : vector<32x128xf32>
    %cst_10 = arith.constant 0.000000e+00 : f32
    %16 = vector.broadcast %cst_10 : f32 to vector<32x128xf32>
    %17 = arith.maximumf %15, %16 : vector<32x128xf32>
    %c0_11 = arith.constant 0 : index
    %c0_12 = arith.constant 0 : index
    %18 = vector.load %arg6[%c0_11, %c0_12] : memref<32x16xf32, #tpu.memory_space<vmem>>, vector<32x16xf32>
    %cst_13 = arith.constant dense<0.000000e+00> : vector<128x16xf32>
    %19 = tpu.matmul %17, %18, %cst_13 {dimension_numbers = #tpu.dot_dimension_numbers<[0], [0], [1], [1], [0, 1, 1, 1], [], []>} : vector<32x128xf32>, vector<32x16xf32>, vector<128x16xf32> -> vector<128x16xf32>
    %c0_14 = arith.constant 0 : index
    %c0_15 = arith.constant 0 : index
    %20 = vector.load %arg7[%c0_14, %c0_15] : memref<1x16xf32, #tpu.memory_space<vmem>>, vector<1x16xf32>
    %21 = vector.broadcast %20 : vector<1x16xf32> to vector<128x16xf32>
    %22 = arith.addf %19, %21 : vector<128x16xf32>
    %23 = arith.index_cast %1 : i32 to index
    %c0_16 = arith.constant 0 : index
    %24 = vector.load %arg8[%23, %c0_16] : memref<128x16xf32, #tpu.memory_space<vmem>>, vector<128x16xf32>
    tpu.vector_store %arg8[%23, %c0_16], %22 {strides = array<i32>} : memref<128x16xf32, #tpu.memory_space<vmem>>, vector<128x16xf32>,
    %c1_i32 = arith.constant 1 : i32
    return
  }
  func.func @transform_0(%arg0: i32) -> (i32, i32) {
    %c0_i32 = arith.constant 0 : i32
    %c0_i32_0 = arith.constant 0 : i32
    return %arg0, %c0_i32 : i32, i32
  }
  func.func @transform_1(%arg0: i32) -> (i32, i32) {
    %c0_i32 = arith.constant 0 : i32
    %c0_i32_0 = arith.constant 0 : i32
    %c0_i32_1 = arith.constant 0 : i32
    return %c0_i32, %c0_i32_0 : i32, i32
  }
  func.func @transform_2(%arg0: i32) -> (i32, i32) {
    %c0_i32 = arith.constant 0 : i32
    %c0_i32_0 = arith.constant 0 : i32
    %c0_i32_1 = arith.constant 0 : i32
    return %c0_i32, %c0_i32_0 : i32, i32
  }
  func.func @transform_3(%arg0: i32) -> (i32, i32) {
    %c0_i32 = arith.constant 0 : i32
    %c0_i32_0 = arith.constant 0 : i32
    %c0_i32_1 = arith.constant 0 : i32
    return %c0_i32, %c0_i32_0 : i32, i32
  }
  func.func @transform_4(%arg0: i32) -> (i32, i32) {
    %c0_i32 = arith.constant 0 : i32
    %c0_i32_0 = arith.constant 0 : i32
    %c0_i32_1 = arith.constant 0 : i32
    return %c0_i32, %c0_i32_0 : i32, i32
  }
  func.func @transform_5(%arg0: i32) -> (i32, i32) {
    %c0_i32 = arith.constant 0 : i32
    %c0_i32_0 = arith.constant 0 : i32
    %c0_i32_1 = arith.constant 0 : i32
    return %c0_i32, %c0_i32_0 : i32, i32
  }
  func.func @transform_6(%arg0: i32) -> (i32, i32) {
    %c0_i32 = arith.constant 0 : i32
    %c0_i32_0 = arith.constant 0 : i32
    %c0_i32_1 = arith.constant 0 : i32
    return %c0_i32, %c0_i32_0 : i32, i32
  }
  func.func @transform_7(%arg0: i32) -> (i32, i32) {
    %c0_i32 = arith.constant 0 : i32
    %c0_i32_0 = arith.constant 0 : i32
    return %arg0, %c0_i32 : i32, i32
  }
}

</mosaic_0001>

<bundles_post_ra>
// kernel: tpu_custom_call.1
= control target key start
LH: loop header
LB: loop body
LE: loop exit
PB: predicated region body
PF: predicated region fallthrough
CT: control target
= control target key end

     0   :  { %12 = vsyncpa [#allocation3], 0  ;;  %vm71_vm0 = vcmask 64512   ;;  %v822_v2 = vmov 0   ;;  %vm249_vm1 = vcmask 261120   ;;  %vm587_vm2 = vcmask 130048   ;;  %s1052_s0 = inlined_call_operand.vmem [shape: f32[10,8], index: 0, kind: input, shape index: {}]   ;;  %s1053_s1 = inlined_call_operand.vmem [shape: f32[32,8], index: 1, kind: input, shape index: {}]   ;;  %s1054_s2 = inlined_call_operand.vmem [shape: f32[32,1], index: 2, kind: input, shape index: {}]   ;;  %s1055_s3 = inlined_call_operand.vmem [shape: f32[32,32], index: 3, kind: input, shape index: {}]   ;;  %s1056_s4 = inlined_call_operand.vmem [shape: f32[32,1], index: 4, kind: input, shape index: {}]   ;;  %s1057_s5 = inlined_call_operand.vmem [shape: f32[32,16], index: 5, kind: input, shape index: {}]   ;;  %s1058_s6 = inlined_call_operand.vmem [shape: f32[1,16], index: 6, kind: input, shape index: {}]   ;;  %s1059_s7 = inlined_call_operand.hbm [shape: f32[10,16], index: 7, kind: output, shape index: {}]  }
   0x1   :  { %v42_v0 = vld [vmem:[%s1052_s0 + $0x78] sm:$0xff]  ;;  %v41_v1 = vld [vmem:[%s1052_s0 + $0x70] sm:$0xff]  ;;  %798 = vset.pattern.permute.xlu0 %v822_v2  ;;  %799 = vset.pattern.permute.xlu1 %v822_v2  ;;  %v40_v3 = vld [vmem:[%s1052_s0 + $0x68] sm:$0xff] }
   0x2   :  { %709 = vmatprep.subr.msk.mxu0 %vm71_vm0, %v42_v0  ;;  %v43_v4 = vld [vmem:[%s1053_s1] sm:$0xff]  ;;  %v50_v5 = vld [vmem:[%s1054_s2 + $0x18] sm:$0xff]  ;;  %v48_v6 = vld [vmem:[%s1054_s2 + $0x8] sm:$0xff] }
   0x3   :  { %710 = vmatpush3.xpose.msk.msra.mxu0 %vm71_vm0, %v42_v0  ;;  %741 = vmatprep.mubr.msk.f32.mxu0 %vm71_vm0, %v43_v4  ;;  %v39_v7 = vld [vmem:[%s1052_s0 + $0x60] sm:$0xff]  ;;  %v49_v8 = vld [vmem:[%s1054_s2 + $0x10] sm:$0xff]  ;;  %v38_v10 = vld [vmem:[%s1052_s0 + $0x58] sm:$0xff] }
   0x4   :  { %711 = vmatprep.subr.msk.mxu0 %vm71_vm0, %v41_v1  ;;  %68 = vperm.xlu0 %798, %v50_v5   ;;  %v47_v9 = vld [vmem:[%s1054_s2] sm:$0xff]  ;;  %v226_v12 = vld [vmem:[%s1056_s4 + $0x8] sm:$0xff]  ;;  %v37_v13 = vld [vmem:[%s1052_s0 + $0x50] sm:$0xff] }
   0x5   :  { %58 = vperm.xlu1 %799, %v48_v6   ;;  %v225_v11 = vld [vmem:[%s1056_s4] sm:$0xff]  ;;  %v227_v14 = vld [vmem:[%s1056_s4 + $0x10] sm:$0xff]  ;;  %v228_v15 = vld [vmem:[%s1056_s4 + $0x18] sm:$0xff] }
   0x6   :  { %v36_v16 = vld [vmem:[%s1052_s0 + $0x48] sm:$0xff]  ;;  %v35_v17 = vld [vmem:[%s1052_s0 + $0x40] sm:$0xff]  ;;  %v34_v18 = vld [vmem:[%s1052_s0 + $0x38] sm:$0xff] }
   0x7   :  { %712 = vmatpush3.xpose.msk.msra.mxu0 %vm71_vm0, %v41_v1  ;;  %v33_v19 = vld [vmem:[%s1052_s0 + $0x30] sm:$0xff]  ;;  %v32_v20 = vld [vmem:[%s1052_s0 + $0x28] sm:$0xff]  ;;  %v31_v21 = vld [vmem:[%s1052_s0 + $0x20] sm:$0xff] }
   0x8   :  { %713 = vmatprep.subr.msk.mxu0 %vm71_vm0, %v40_v3  ;;  %63 = vperm.xlu0 %798, %v49_v8   ;;  %v30_v22 = vld [vmem:[%s1052_s0 + $0x18] sm:$0xff]  ;;  %v29_v23 = vld [vmem:[%s1052_s0 + $0x10] sm:$0xff]  ;;  %v28_v24 = vld [vmem:[%s1052_s0 + $0x8] sm:$0xff] }
   0x9   :  { %53 = vperm.xlu1 %799, %v47_v9   ;;  %v27_v25 = vld [vmem:[%s1052_s0] sm:$0xff]  ;;  %v44_v26 = vld [vmem:[%s1053_s1 + $0x8] sm:$0xff]  ;;  %v45_v27 = vld [vmem:[%s1053_s1 + $0x10] sm:$0xff] }
   0xa   :  { %v46_v28 = vld [vmem:[%s1053_s1 + $0x18] sm:$0xff]  ;;  %v221_v29 = vld [vmem:[%s1055_s3] sm:$0xff]  ;;  %v222_v46 = vld [vmem:[%s1055_s3 + $0x8] sm:$0xff] }
   0xb   :  { %714 = vmatpush3.xpose.msk.msra.mxu0 %vm71_vm0, %v40_v3  ;;  %755 = vmatprep.mubr.msk.f32.mxu1 %vm249_vm1, %v221_v29  ;;  %v223_v47 = vld [vmem:[%s1055_s3 + $0x10] sm:$0xff]  ;;  %v224_v48 = vld [vmem:[%s1055_s3 + $0x18] sm:$0xff]  ;;  %v352_v55 = vld [vmem:[%s1057_s5 + $0x8] sm:$0xff] }
   0xc   :  { %715 = vmatprep.subr.msk.mxu0 %vm71_vm0, %v39_v7  ;;  %231 = vperm.xlu0 %798, %v225_v11   ;;  %v354_v49 = vld [vmem:[%s1057_s5 + $0x18] sm:$0xff]  ;;  %v353_v50 = vld [vmem:[%s1057_s5 + $0x10] sm:$0xff]  ;;  %v351_v58 = vld [vmem:[%s1057_s5] sm:$0xff] }
   0xd   :  { %236 = vperm.xlu1 %799, %v226_v12  }
   0xf   :  { %716 = vmatpush3.xpose.msk.msra.mxu0 %vm71_vm0, %v39_v7 }
  0x10   :  { %717 = vmatprep.subr.msk.mxu0 %vm71_vm0, %v38_v10  ;;  %241 = vperm.xlu0 %798, %v227_v14  }
  0x11   :  { %246 = vperm.xlu1 %799, %v228_v15  }
  0x13   :  { %718 = vmatpush3.xpose.msk.msra.mxu0 %vm71_vm0, %v38_v10 }
  0x14   :  { %719 = vmatprep.subr.msk.mxu0 %vm71_vm0, %v37_v13 }
  0x17   :  { %720 = vmatpush3.xpose.msk.msra.mxu0 %vm71_vm0, %v37_v13 }
  0x18   :  { %721 = vmatprep.subr.msk.mxu0 %vm71_vm0, %v36_v16 }
  0x1b   :  { %722 = vmatpush3.xpose.msk.msra.mxu0 %vm71_vm0, %v36_v16 }
  0x1c   :  { %723 = vmatprep.subr.msk.mxu0 %vm71_vm0, %v35_v17 }
  0x1f   :  { %724 = vmatpush3.xpose.msk.msra.mxu0 %vm71_vm0, %v35_v17 }
  0x20   :  { %725 = vmatprep.subr.msk.mxu0 %vm71_vm0, %v34_v18 }
  0x23   :  { %726 = vmatpush3.xpose.msk.msra.mxu0 %vm71_vm0, %v34_v18 }
  0x24   :  { %727 = vmatprep.subr.msk.mxu0 %vm71_vm0, %v33_v19 }
  0x27   :  { %728 = vmatpush3.xpose.msk.msra.mxu0 %vm71_vm0, %v33_v19 }
  0x28   :  { %729 = vmatprep.subr.msk.mxu0 %vm71_vm0, %v32_v20 }
  0x2b   :  { %730 = vmatpush3.xpose.msk.msra.mxu0 %vm71_vm0, %v32_v20 }
  0x2c   :  { %731 = vmatprep.subr.msk.mxu0 %vm71_vm0, %v31_v21 }
  0x2f   :  { %732 = vmatpush3.xpose.msk.msra.mxu0 %vm71_vm0, %v31_v21  ;;  %v644_v21 = vld [vmem:[%s1058_s6] ss:$0 sm:$0xff] }
  0x30   :  { %733 = vmatprep.subr.msk.mxu0 %vm71_vm0, %v30_v22 }
  0x33   :  { %734 = vmatpush3.xpose.msk.msra.mxu0 %vm71_vm0, %v30_v22 }
  0x34   :  { %735 = vmatprep.subr.msk.mxu0 %vm71_vm0, %v29_v23 }
  0x37   :  { %736 = vmatpush3.xpose.msk.msra.mxu0 %vm71_vm0, %v29_v23 }
  0x38   :  { %737 = vmatprep.subr.msk.mxu0 %vm71_vm0, %v28_v24 }
  0x3b   :  { %738 = vmatpush3.xpose.msk.msra.mxu0 %vm71_vm0, %v28_v24 }
  0x3c   :  { %739 = vmatprep.subr.msk.mxu0 %vm71_vm0, %v27_v25 }
  0x3f   :  { %740 = vmatpush3.xpose.msk.msra.mxu0 %vm71_vm0, %v27_v25 }
  0x42   :  { %742 = vmatmul.mubr.msk.f32.vlgmr.msra.gmra.mxu0 %vm71_vm0, %v44_v26 }
  0x43   :  { %744 = vmatprep.mubr.msk.f32.mxu0 %vm71_vm0, %v45_v27 }
  0x46   :  { %745 = vmatmul.mubr.msk.f32.gmra.mxu0 %vm71_vm0, %v46_v28 }
  0x7f   :  { %v69_v30 = vpop.permute.xlu0 %68 }
  0x80   :  { %v59_v32 = vpop.permute.xlu1 %58 }
  0x83   :  { %v64_v36 = vpop.permute.xlu0 %63 }
  0x84   :  { %v54_v41 = vpop.permute.xlu1 %53 }
  0x87   :  { %v232_v52 = vpop.permute.xlu0 %231 }
  0x88   :  { %v237_v56 = vpop.permute.xlu1 %236 }
  0x8b   :  { %v242_v62 = vpop.permute.xlu0 %241 }
  0x8c   :  { %v247_v1 = vpop.permute.xlu1 %246 }
 0x102   :  { %v743_v31 = vpop.f32.mrf.mxu0 }
 0x103   :  { %v204_v38 = vadd.f32 %v743_v31, %v59_v32 }
 0x104   :  { %v198_v33 = vpop.f32.mrf.mxu0 }
 0x105   :  { %v199_v42 = vadd.f32 %v198_v33, %v54_v41  ;;  %v218_v44 = vmax.f32 %v204_v38, 0.0 }
 0x106   :  { %v746_v34 = vpop.f32.mrf.mxu0 }
 0x107   :  { %v214_v35 = vadd.f32 %v746_v34, %v69_v30  ;;  %v217_v45 = vmax.f32 %v199_v42, 0.0 }
 0x108   :  { %v208_v37 = vpop.f32.mrf.mxu0 }
 0x109   :  { %v220_v39 = vmax.f32 %v214_v35, 0.0  ;;  %v209_v40 = vadd.f32 %v208_v37, %v64_v36 }
 0x10b   :  { %v219_v43 = vmax.f32 %v209_v40, 0.0  ;;  %747 = vmatprep.subr.mxu1 %v220_v39 }
 0x10c   :  { %748 = vmatpush3.msra.mxu1 %v220_v39 }
 0x10d   :  { %749 = vmatprep.subr.mxu1 %v219_v43 }
 0x10e   :  { %750 = vmatpush3.msra.mxu1 %v219_v43 }
 0x10f   :  { %751 = vmatprep.subr.mxu1 %v218_v44 }
 0x110   :  { %752 = vmatpush3.msra.mxu1 %v218_v44 }
 0x111   :  { %753 = vmatprep.subr.mxu1 %v217_v45 }
 0x112   :  { %754 = vmatpush3.msra.mxu1 %v217_v45 }
 0x113   :  { %756 = vmatmul.mubr.msk.f32.vlgmr.msra.gmra.mxu1 %vm249_vm1, %v222_v46  ;;  %761 = vmatprep.subr.mxu1 %v354_v49 }
 0x114   :  { %758 = vmatprep.mubr.msk.f32.mxu1 %vm249_vm1, %v223_v47  ;;  %762 = vmatpush3.msra.mxu1 %v354_v49 }
 0x115   :  { %763 = vmatprep.subr.mxu1 %v353_v50 }
 0x116   :  { %764 = vmatpush3.msra.mxu1 %v353_v50 }
 0x117   :  { %759 = vmatmul.mubr.msk.f32.gmra.mxu1 %vm249_vm1, %v224_v48  ;;  %765 = vmatprep.subr.mxu1 %v352_v55 }
 0x118   :  { %766 = vmatpush3.msra.mxu1 %v352_v55 }
 0x119   :  { %767 = vmatprep.subr.mxu1 %v351_v58 }
 0x11a   :  { %768 = vmatpush3.msra.mxu1 %v351_v58 }
 0x1d3   :  { %v757_v51 = vpop.f32.mrf.mxu1 }
 0x1d4   :  { %v334_v59 = vadd.f32 %v757_v51, %v237_v56 }
 0x1d5   :  { %v328_v53 = vpop.f32.mrf.mxu1 }
 0x1d6   :  { %v329_v54 = vadd.f32 %v328_v53, %v232_v52  ;;  %v348_v63 = vmax.f32 %v334_v59, 0.0 }
 0x1d7   :  { %v760_v57 = vpop.f32.mrf.mxu1 }
 0x1d8   :  { %v347_v60 = vmax.f32 %v329_v54, 0.0  ;;  %v344_v2 = vadd.f32 %v760_v57, %v247_v1 }
 0x1d9   :  { %v338_v61 = vpop.f32.mrf.mxu1 }
 0x1da   :  { %362 = vxpose.xlu0.b32.start [1/4] (short) %v347_v60, 128  ;;  %v339_v0 = vadd.f32 %v338_v61, %v242_v62  ;;  %v350_v4 = vmax.f32 %v344_v2, 0.0 }
 0x1dc   :  { %v349_v3 = vmax.f32 %v339_v0, 0.0 }
 0x1de   :  { %363 = vxpose.xlu0.b32.cont [2/4] (short) %v348_v63, 128 }
 0x1e2   :  { %364 = vxpose.xlu0.b32.cont [3/4] (short) %v349_v3, 128 }
 0x1e6   :  { %365 = vxpose.xlu0.b32.end [4/4] (short) %v350_v4, 128 }
 0x256   :  { %v378_v5 = vpop.trf.xlu0 }
 0x257   :  { %769 = vmatprep.mubr.msk.f32.mxu1 %vm249_vm1, %v378_v5 }
 0x25a   :  { %v379_v6 = vpop.trf.xlu0 }
 0x25b   :  { %770 = vmatmul.mubr.msk.f32.vlgmr.msra.gmra.mxu1 %vm249_vm1, %v379_v6 }
 0x25e   :  { %v380_v7 = vpop.trf.xlu0 }
 0x25f   :  { %772 = vmatprep.mubr.msk.f32.mxu1 %vm249_vm1, %v380_v7 }
 0x262   :  { %v381_v8 = vpop.trf.xlu0 }
 0x263   :  { %773 = vmatmul.mubr.msk.f32.gmra.mxu1 %vm249_vm1, %v381_v8 }
 0x266   :  { %v382_v9 = vpop.trf.xlu0 }
 0x267   :  { %775 = vmatprep.mubr.msk.f32.mxu1 %vm249_vm1, %v382_v9 }
 0x26a   :  { %v383_v10 = vpop.trf.xlu0 }
 0x26b   :  { %776 = vmatmul.mubr.msk.f32.gmra.mxu1 %vm249_vm1, %v383_v10 }
 0x26e   :  { %v384_v11 = vpop.trf.xlu0 }
 0x26f   :  { %778 = vmatprep.mubr.msk.f32.mxu1 %vm249_vm1, %v384_v11 }
 0x272   :  { %v385_v12 = vpop.trf.xlu0 }
 0x273   :  { %779 = vmatmul.mubr.msk.f32.gmra.mxu1 %vm249_vm1, %v385_v12 }
 0x276   :  { %v386_v13 = vpop.trf.xlu0 }
 0x277   :  { %781 = vmatprep.mubr.msk.f32.mxu1 %vm249_vm1, %v386_v13 }
 0x27a   :  { %v387_v14 = vpop.trf.xlu0 }
 0x27b   :  { %782 = vmatmul.mubr.msk.f32.gmra.mxu1 %vm249_vm1, %v387_v14 }
 0x27e   :  { %v388_v15 = vpop.trf.xlu0 }
 0x27f   :  { %784 = vmatprep.mubr.msk.f32.mxu1 %vm249_vm1, %v388_v15 }
 0x282   :  { %v389_v16 = vpop.trf.xlu0 }
 0x283   :  { %785 = vmatmul.mubr.msk.f32.gmra.mxu1 %vm249_vm1, %v389_v16 }
 0x286   :  { %v390_v17 = vpop.trf.xlu0 }
 0x287   :  { %787 = vmatprep.mubr.msk.f32.mxu1 %vm249_vm1, %v390_v17 }
 0x28a   :  { %v391_v18 = vpop.trf.xlu0 }
 0x28b   :  { %788 = vmatmul.mubr.msk.f32.gmra.mxu1 %vm249_vm1, %v391_v18 }
 0x28e   :  { %v392_v19 = vpop.trf.xlu0 }
 0x28f   :  { %790 = vmatprep.mubr.msk.f32.mxu1 %vm249_vm1, %v392_v19 }
 0x292   :  { %v393_v20 = vpop.trf.xlu0 }
 0x293   :  { %791 = vmatmul.mubr.msk.f32.gmra.mxu1 %vm249_vm1, %v393_v20 }
 0x31b   :  { %v771_v22 = vpop.f32.mrf.mxu1 }
 0x31c   :  { %v514_v23 = vadd.f32 %v771_v22, %v644_v21 }
 0x31d   :  { %v508_v24 = vpop.f32.mrf.mxu1 }
 0x31e   :  { %589 = vst.msk [vmem:[#allocation2 + $0x8] sm:$0xff] %vm587_vm2, %v514_v23  ;;  %v509_v25 = vadd.f32 %v644_v21, %v508_v24 }
 0x320   :  { %588 = vst.msk [vmem:[#allocation2] sm:$0xff] %vm587_vm2, %v509_v25 }
 0x323   :  { %v774_v26 = vpop.f32.mrf.mxu1 }
 0x324   :  { %v524_v27 = vadd.f32 %v774_v26, %v644_v21 }
 0x325   :  { %v518_v28 = vpop.f32.mrf.mxu1 }
 0x326   :  { %591 = vst.msk [vmem:[#allocation2 + $0x18] sm:$0xff] %vm587_vm2, %v524_v27  ;;  %v519_v29 = vadd.f32 %v644_v21, %v518_v28 }
 0x328   :  { %590 = vst.msk [vmem:[#allocation2 + $0x10] sm:$0xff] %vm587_vm2, %v519_v29 }
 0x32b   :  { %v777_v30 = vpop.f32.mrf.mxu1 }
 0x32c   :  { %v534_v31 = vadd.f32 %v777_v30, %v644_v21 }
 0x32d   :  { %v528_v32 = vpop.f32.mrf.mxu1 }
 0x32e   :  { %593 = vst.msk [vmem:[#allocation2 + $0x28] sm:$0xff] %vm587_vm2, %v534_v31  ;;  %v529_v33 = vadd.f32 %v644_v21, %v528_v32 }
 0x330   :  { %592 = vst.msk [vmem:[#allocation2 + $0x20] sm:$0xff] %vm587_vm2, %v529_v33 }
 0x333   :  { %v780_v34 = vpop.f32.mrf.mxu1 }
 0x334   :  { %v544_v35 = vadd.f32 %v780_v34, %v644_v21 }
 0x335   :  { %v538_v36 = vpop.f32.mrf.mxu1 }
 0x336   :  { %595 = vst.msk [vmem:[#allocation2 + $0x38] sm:$0xff] %vm587_vm2, %v544_v35  ;;  %v539_v37 = vadd.f32 %v644_v21, %v538_v36 }
 0x338   :  { %594 = vst.msk [vmem:[#allocation2 + $0x30] sm:$0xff] %vm587_vm2, %v539_v37 }
 0x33b   :  { %v783_v38 = vpop.f32.mrf.mxu1 }
 0x33c   :  { %v554_v39 = vadd.f32 %v783_v38, %v644_v21 }
 0x33d   :  { %v548_v40 = vpop.f32.mrf.mxu1 }
 0x33e   :  { %597 = vst.msk [vmem:[#allocation2 + $0x48] sm:$0xff] %vm587_vm2, %v554_v39  ;;  %v549_v41 = vadd.f32 %v644_v21, %v548_v40 }
 0x340   :  { %596 = vst.msk [vmem:[#allocation2 + $0x40] sm:$0xff] %vm587_vm2, %v549_v41 }
 0x343   :  { %v786_v42 = vpop.f32.mrf.mxu1 }
 0x344   :  { %v564_v43 = vadd.f32 %v786_v42, %v644_v21 }
 0x345   :  { %v558_v44 = vpop.f32.mrf.mxu1 }
 0x346   :  { %599 = vst.msk [vmem:[#allocation2 + $0x58] sm:$0xff] %vm587_vm2, %v564_v43  ;;  %v559_v45 = vadd.f32 %v644_v21, %v558_v44 }
 0x348   :  { %598 = vst.msk [vmem:[#allocation2 + $0x50] sm:$0xff] %vm587_vm2, %v559_v45 }
 0x34b   :  { %v789_v46 = vpop.f32.mrf.mxu1 }
 0x34c   :  { %v574_v47 = vadd.f32 %v789_v46, %v644_v21 }
 0x34d   :  { %v568_v48 = vpop.f32.mrf.mxu1 }
 0x34e   :  { %601 = vst.msk [vmem:[#allocation2 + $0x68] sm:$0xff] %vm587_vm2, %v574_v47  ;;  %v569_v49 = vadd.f32 %v644_v21, %v568_v48 }
 0x350   :  { %600 = vst.msk [vmem:[#allocation2 + $0x60] sm:$0xff] %vm587_vm2, %v569_v49 }
 0x353   :  { %v792_v50 = vpop.f32.mrf.mxu1 }
 0x354   :  { %v584_v51 = vadd.f32 %v792_v50, %v644_v21 }
 0x355   :  { %v578_v52 = vpop.f32.mrf.mxu1 }
 0x356   :  { %603 = vst.msk [vmem:[#allocation2 + $0x78] sm:$0xff] %vm587_vm2, %v584_v51  ;;  %v579_v53 = vadd.f32 %v644_v21, %v578_v52 }
 0x358   :  { %602 = vst.msk [vmem:[#allocation2 + $0x70] sm:$0xff] %vm587_vm2, %v579_v53 }
 0x359   :  { %608 = vsyncadd [#allocation3], 1792  ;;  %s823_s6 = smov [#allocation2]  }
 0x35a   :  { %s609_s21 = sshll.u32 %s823_s6, 4  ;;  %s610_s21 = int_to_ptr.vmem [resolvable:$true] %s609_s21 }
 0x35b   :  { %s800_s22 = scalar_lea.vmem %s610_s21, 256  ;;  %s804_s23 = scalar_lea.vmem %s610_s21, 2048 }
 0x35c   :  { %p801_p0 = scmp.ne.s32.totalorder %s610_s21, %s800_s22  ;;  %p805_p1 = scmp.lt.s32.totalorder %s610_s21, %s610_s21 }
 0x35d   :  { %p806_p2 = scmp.lt.s32.totalorder %s804_s23, %s800_s22 }
 0x35f   :  { %p807_p3 = por %p806_p2, %p805_p1 }
 0x361   :  { %p808_p4 = pnand %p807_p3, %p801_p0 }
 0x363   :  { %811 = shalt.err (!%p808_p4)
}
 0x364   :  { %s824_s24 = smov 128   ;;  %s825_s2 = smov 8  }
 0x365   :  { %615 = dma.vmem_to_hbm [thread:$0]  %s610_s21, 256, %s1059_s7, [#allocation3], %s824_s24, %s824_s24, %s825_s2  }
 0x366   :  { %820 = dma.done.wait [#allocation3], 2048  }
 0x367   :  { %821 = vsyncadd [#allocation3], 4294965248 }
 0x368   :  { %619 = vsyncpa [#allocation3], 1 }

</bundles_post_ra>
